<compile_context>
chip_gen: v7x
topology: tpu7x:2x2x1
jax: 0.10.0
libtpu: 0.0.40
codegen_flags: <defaults>
</compile_context>

<pallas_src>
import jax
import jax.numpy as jnp
from jax.experimental import pallas as pl
from jax.experimental.pallas import tpu as pltpu

_INV6 = 1.0 / 6.0


def _discrete_tanh_kernel(x_ref, o_ref):
    x = x_ref[...]
    t = jnp.tanh(x)                                   # nn.Tanh()
    o_ref[...] = (jnp.floor(t * 6.0) * _INV6).astype(o_ref.dtype)  # floor(t*6)/6


def _discrete_tanh_ref(x: jax.Array) -> jax.Array:
    return (jnp.floor(jnp.tanh(x) * 6.0) / 6.0).astype(x.dtype)


def discrete_tanh(x: jax.Array, *, target_block_bytes: int = 2 * 1024 * 1024) -> jax.Array:
    """Applies floor(tanh(x) * 6) / 6 elementwise via a Pallas TPU kernel."""
    orig_shape = x.shape
    dtype = x.dtype
    n = x.size
    itemsize = jnp.dtype(dtype).itemsize
    # Minimum sublane count per block for this dtype (packing along sublanes).
    sub_min = {1: 32, 2: 16}.get(itemsize, 8)

    flat = x.reshape(-1)

    # Small-input bypass: below one minimal (sub_min, 128) tile, kernel-launch
    # and pipeline overhead dominate; plain XLA is strictly better.
    if n < sub_min * 128:
        return _discrete_tanh_ref(flat).reshape(orig_shape)

    # Pad only when the element count is not 128-aligned (rare for NN shapes);
    # this is the only case that costs an extra HBM pass.
    m = n
    padded = False
    if n % 128 != 0:
        m = pl.cdiv(n, 128) * 128
        flat = jnp.pad(flat, (0, m - n))
        padded = True

    # Widest lane-dense slab the element count supports (lane dim multiple of 128).
    W = 128
    for cand in (4096, 2048, 1024, 512, 256):
        if m % cand == 0 and m // cand >= sub_min:
            W = cand
            break
    rows = m // W
    x2d = flat.reshape(rows, W)  # free: pure row-major reinterpretation

    # Block rows: aim for ~target_block_bytes per block, multiple of sub_min,
    # capped at the (rounded-up) row count.  Partial last block handled by
    # Pallas masking -- no need for tr to divide rows.
    tr = max(sub_min, (target_block_bytes // (W * itemsize)) // sub_min * sub_min)
    tr = min(tr, pl.cdiv(rows, sub_min) * sub_min)
    grid = (pl.cdiv(rows, tr),)

    out2d = pl.pallas_call(
        _discrete_tanh_kernel,
        out_shape=jax.ShapeDtypeStruct((rows, W), dtype),
        grid_spec=pltpu.PrefetchScalarGridSpec(
            num_scalar_prefetch=0,
            grid=grid,
            in_specs=[pl.BlockSpec((tr, W), lambda i: (i, 0))],
            out_specs=pl.BlockSpec((tr, W), lambda i: (i, 0)),
        ),
        compiler_params=pltpu.CompilerParams(
            # Independent rows: shard the grid across TensorCores (v7x megacore).
            dimension_semantics=("parallel",),
            # 2 MiB blocks * (in + out) * double-buffering = ~8 MiB VMEM; fits
            # every generation's scoped default, so vmem_limit_bytes is left
            # unset.  Raise it if target_block_bytes is increased.
        ),
    )(x2d)

    out_flat = out2d.reshape(-1)
    if padded:
        out_flat = out_flat[:n]
    return out_flat.reshape(orig_shape)


if __name__ == "__main__":
    key = jax.random.PRNGKey(0)
    # NCHW-like input consistent with a generic activation module.
    x = jax.random.normal(key, (2, 4, 16, 16), dtype=jnp.float32) * 2.0

    out = discrete_tanh(x)
    jax.block_until_ready(out)

    ref = jnp.floor(jnp.tanh(x) * 6.0) / 6.0
    assert out.shape == x.shape and out.dtype == x.dtype
    assert jnp.allclose(out, ref, atol=1e-6), "mismatch vs reference"

    print("KERNEL_OK")
</pallas_src>

<mosaic_0001>
module attributes {stable_mosaic.version = 11 : i64} {
  func.func @_discrete_tanh_kernel(%arg0: i32, %arg1: memref<8x256xf32, #tpu.memory_space<vmem>>, %arg2: memref<8x256xf32, #tpu.memory_space<vmem>>) attributes {dimension_semantics = [#tpu.dimension_semantics<parallel>], iteration_bounds = array<i64: 1>, scalar_prefetch = 0 : i64, scratch_operands = 0 : i64, tpu.core_type = #tpu.core_type<tc>, window_params = [{transform_indices = @transform_0, window_bounds = array<i64: 8, 256>}, {transform_indices = @transform_1, window_bounds = array<i64: 8, 256>}]} {
    %c0 = arith.constant 0 : index
    %c0_0 = arith.constant 0 : index
    %0 = vector.load %arg1[%c0, %c0_0] : memref<8x256xf32, #tpu.memory_space<vmem>>, vector<8x256xf32>
    %1 = math.tanh %0 : vector<8x256xf32>
    %cst = arith.constant 6.000000e+00 : f32
    %2 = vector.broadcast %cst : f32 to vector<8x256xf32>
    %3 = arith.mulf %1, %2 : vector<8x256xf32>
    %4 = math.floor %3 : vector<8x256xf32>
    %cst_1 = arith.constant 0.166666672 : f32
    %5 = vector.broadcast %cst_1 : f32 to vector<8x256xf32>
    %6 = arith.mulf %4, %5 : vector<8x256xf32>
    %c0_2 = arith.constant 0 : index
    %c0_3 = arith.constant 0 : index
    %7 = vector.load %arg2[%c0_2, %c0_3] : memref<8x256xf32, #tpu.memory_space<vmem>>, vector<8x256xf32>
    tpu.vector_store %arg2[%c0_2, %c0_3], %6 {strides = array<i32>} : memref<8x256xf32, #tpu.memory_space<vmem>>, vector<8x256xf32>,
    return
  }
  func.func @transform_0(%arg0: i32) -> (i32, i32) {
    %c0_i32 = arith.constant 0 : i32
    %c0_i32_0 = arith.constant 0 : i32
    return %arg0, %c0_i32 : i32, i32
  }
  func.func @transform_1(%arg0: i32) -> (i32, i32) {
    %c0_i32 = arith.constant 0 : i32
    %c0_i32_0 = arith.constant 0 : i32
    return %arg0, %c0_i32 : i32, i32
  }
}

</mosaic_0001>

<bundles_post_ra>
// kernel: tpu_custom_call.1
= control target key start
LH: loop header
LB: loop body
LE: loop exit
PB: predicated region body
PF: predicated region fallthrough
CT: control target
= control target key end

     0   :  { %6 = vsyncpa [#allocation3], 0  ;;  %s138_s0 = inlined_call_operand.hbm [shape: f32[8,256], index: 0, kind: input, shape index: {}]   ;;  %s139_s1 = inlined_call_operand.hbm [shape: f32[8,256], index: 1, kind: output, shape index: {}]  }
   0x1   :  { %7 = vsyncpa [#allocation4], 0  ;;  %s102_s6 = smov [#allocation2]   ;;  %s54_s10 = scalar_lea.hbm %s138_s0, 256 }
   0x2   :  { %s14_s7 = sshll.u32 %s102_s6, 4  ;;  %p55_p0 = scmp.ne.s32.totalorder %s138_s0, %s54_s10  ;;  %s15_s7 = int_to_ptr.vmem [resolvable:$true] %s14_s7 }
   0x3   :  { %p58_p1 = scmp.lt.u32.totalorder %s54_s10, %s138_s0 }
   0x5   :  { %p60_p2 = pnand %p58_p1, %p55_p0 }
   0x7   :  { %63 = shalt.err (!%p60_p2)
}
   0x8   :  { %s64_s15 = scalar_lea.vmem %s15_s7, 256  ;;  %p69_p4 = scmp.lt.s32.totalorder %s15_s7, %s15_s7 }
   0x9   :  { %p65_p3 = scmp.ne.s32.totalorder %s15_s7, %s64_s15  ;;  %p70_p5 = scmp.lt.s32.totalorder %s64_s15, %s64_s15 }
   0xb   :  { %p71_p6 = por %p70_p5, %p69_p4 }
   0xd   :  { %p72_p7 = pnand %p71_p6, %p65_p3 }
   0xf   :  { %75 = shalt.err (!%p72_p7)
}
  0x10   :  { %17 = dma.hbm_to_vmem [thread:$0]  %s138_s0, 256, %s15_s7, [#allocation3]  }
  0x11   :  { %98 = dma.done.wait [#allocation3], 256  }
  0x12   :  { %99 = vsyncadd [#allocation3], 4294967040  ;;  %v21_v0 = vld [vmem:[#allocation2] sm:$0xff]  ;;  %v22_v1 = vld [vmem:[#allocation2 + $0x8] sm:$0xff]  ;;  %s103_s18 = smov [#allocation5]  }
  0x13   :  { %50 = vtanh.f32 %v21_v0  ;;  %s39_s19 = sshll.u32 %s103_s18, 4  ;;  %s40_s19 = int_to_ptr.vmem [resolvable:$true] %s39_s19 }
  0x14   :  { %52 = vtanh.f32 %v22_v1  ;;  %s76_s0 = scalar_lea.vmem %s40_s19, 256  ;;  %p81_p9 = scmp.lt.s32.totalorder %s40_s19, %s40_s19 }
  0x15   :  { %p77_p8 = scmp.ne.s32.totalorder %s40_s19, %s76_s0  ;;  %p82_p10 = scmp.lt.s32.totalorder %s76_s0, %s76_s0 }
  0x17   :  { %p83_p11 = por %p82_p10, %p81_p9 }
  0x19   :  { %p84_p12 = pnand %p83_p11, %p77_p8 }
  0x1d   :  { %v51_v2 = vpop.eup %50 }
  0x1e   :  { %v53_v3 = vpop.eup %52  ;;  %v25_v4 = vmul.f32 6.0, %v51_v2 }
  0x1f   :  { %v26_v5 = vmul.f32 6.0, %v53_v3 }
  0x20   :  { %v27_v6 = vfloor.f32 %v25_v4 }
  0x21   :  { %v28_v7 = vfloor.f32 %v26_v5 }
  0x22   :  { %v29_v8 = vmul.f32 0.16666667, %v27_v6 }
  0x23   :  { %v30_v9 = vmul.f32 0.16666667, %v28_v7 }
  0x24   :  { %31 = vst [vmem:[#allocation5] sm:$0xff] %v29_v8 }
  0x25   :  { %32 = vst [vmem:[#allocation5 + $0x8] sm:$0xff] %v30_v9 }
  0x26   :  { %87 = shalt.err (!%p84_p12)
}
  0x27   :  { %s88_s22 = scalar_lea.hbm %s139_s1, 256 }
  0x28   :  { %p89_p13 = scmp.ne.s32.totalorder %s139_s1, %s88_s22  ;;  %p92_p0 = scmp.lt.u32.totalorder %s88_s22, %s139_s1 }
  0x2a   :  { %p94_p1 = pnand %p92_p0, %p89_p13 }
  0x2c   :  { %97 = shalt.err (!%p94_p1)
}
  0x2d   :  { %42 = dma.vmem_to_hbm [thread:$0]  %s40_s19, 256, %s139_s1, [#allocation4]  }
  0x2e   :  { %100 = dma.done.wait [#allocation4], 256  }
  0x2f   :  { %101 = vsyncadd [#allocation4], 4294967040 }
  0x30   :  { %46 = vsyncpa [#allocation3], 1 }
  0x31   :  { %47 = vsyncpa [#allocation4], 1 }

</bundles_post_ra>
